<compile_context>
chip_gen: v7x
topology: tpu7x:2x2x1
jax: 0.10.0
libtpu: 0.0.40
codegen_flags: <defaults>
</compile_context>

<pallas_src>
import functools

import jax
import jax.numpy as jnp
from jax.experimental import pallas as pl
from jax.experimental.pallas import tpu as pltpu


def _round_up(x: int, m: int) -> int:
    return ((x + m - 1) // m) * m


def _vmem_capacity_bytes() -> int:
    try:
        return int(pltpu.get_tpu_info().vmem_capacity_bytes)
    except Exception:
        return 64 * 1024 * 1024        # conservative: v7x per-core VMEM


def _choose_tile_n(N: int, FC: int, Hp: int, D1p: int) -> int:
    """Largest multiple-of-16 row tile whose buffers fit comfortably in VMEM."""
    cap = _vmem_capacity_bytes()
    resident = FC * D1p * 2 + D1p * Hp * 2 + Hp * 4          # single-copy weights
    per_row = 2 * (FC * 2 + Hp * 2 + Hp * 4)                  # double-buffered streams
    budget = int(cap * 0.7) - resident - (2 << 20)
    tn = budget // per_row if budget > 0 else 16
    tn = min(tn, 2048, _round_up(N, 16))
    tn = max(16, (tn // 16) * 16)
    return tn


def _vmem_limit_bytes(tn: int, FC: int, Hp: int, D1p: int) -> int:
    cap = _vmem_capacity_bytes()
    resident = FC * D1p * 2 + D1p * Hp * 2 + Hp * 4
    streams = 2 * tn * (FC * 2 + Hp * 2 + Hp * 4)
    need = resident + streams + (4 << 20)                     # compiler headroom
    return int(min(max(need, 16 << 20), cap - (8 << 20)))


def prepare_params(params):
    """One-time weight preparation (hoisted out of the per-step forward path)."""
    ifeat_table = jnp.asarray(params["ifeature_cache"], jnp.float32)   # (V, F)
    tok_table = jnp.asarray(params["token_embedding"], jnp.float32)    # (V, H)
    ac_w = jnp.asarray(params["ac_encoder_w"], jnp.float32)            # (4H, F+C)
    ac_b = jnp.asarray(params["ac_encoder_b"], jnp.float32)            # (4H,)
    it_w = jnp.asarray(params["item_encoder_w"], jnp.float32)          # (H, 5H)
    it_b = jnp.asarray(params["item_encoder_b"], jnp.float32)          # (H,)

    FC = ac_w.shape[1]
    H = tok_table.shape[1]
    D1 = ac_b.shape[0]
    Hp = _round_up(H, 128)                     # lane-dense output width
    D1p = _round_up(D1, 128)                   # lane-dense intermediate width

    # ac_encoder weight acting on [ifeat | icontext], transposed + zero-padded.
    w1 = jnp.zeros((FC, D1p), jnp.float32).at[:, :D1].set(ac_w.T)

    w2_t = it_w.T                              # (H + 4H, H)
    w2a = w2_t[:H]                             # slice acting on token embedding
    w2b = jnp.zeros((D1p, Hp), jnp.float32).at[:D1, :H].set(w2_t[H:])

    # Fold ac_encoder bias through item_encoder into one exact f32 output bias:
    # out = tok@W2a + (ac@W1)@W2b + (b1@W2b + b2)
    b2_eff = jnp.zeros((1, Hp), jnp.float32).at[:, :H].set(ac_b @ w2_t[H:] + it_b)

    # Pre-fuse frozen token table with its weight slice: matmul -> gather.
    # padding_idx=0 semantics preserved (zero row of token_embedding stays zero).
    fused_tok = jnp.zeros((tok_table.shape[0], Hp), jnp.float32)
    fused_tok = fused_tok.at[:, :H].set(tok_table @ w2a)

    return {
        "ifeature_bf16": ifeat_table.astype(jnp.bfloat16),
        "fused_tok_bf16": fused_tok.astype(jnp.bfloat16),
        "w1_bf16": w1.astype(jnp.bfloat16),
        "w2b_bf16": w2b.astype(jnp.bfloat16),
        "b2_eff": b2_eff,
        "hidden_dim": int(H),
    }


def _encoder_kernel(ac_ref, tokf_ref, w1_ref, w2b_ref, b2_ref, out_ref):
    """out = fused_tok + ([ifeat|ictx] @ W1) @ W2b + b2_eff  (f32 accumulation)."""
    acv = jnp.dot(ac_ref[...], w1_ref[...],
                  preferred_element_type=jnp.float32)              # (tn, 4H_pad) f32
    out = (tokf_ref[...].astype(jnp.float32)                       # pre-fused token term
           + jnp.dot(acv.astype(jnp.bfloat16), w2b_ref[...],
                     preferred_element_type=jnp.float32)
           + b2_ref[...])                                          # (tn, H_pad) f32
    out_ref[...] = out.astype(out_ref.dtype)


@functools.partial(jax.jit, static_argnames=("hidden_dim", "tile_n"))
def _forward(tokens, icontexts, ifeature_bf16, fused_tok_bf16,
             w1_bf16, w2b_bf16, b2_eff, *, hidden_dim, tile_n=None):
    B, S = tokens.shape
    N = B * S
    F = ifeature_bf16.shape[1]
    C = icontexts.shape[-1]
    FC = F + C
    D1p, Hp = w2b_bf16.shape
    H = hidden_dim

    if tile_n is None:
        tn = _choose_tile_n(N, FC, Hp, D1p)
    else:
        tn = max(16, (min(int(tile_n), _round_up(N, 16)) // 16) * 16)
    n_pad = _round_up(N, tn)

    # ---- gathers (JAX) + row flattening / padding --------------------------
    ifeat = ifeature_bf16[tokens]                                  # (B, S, F)  bf16
    ac_in = jnp.concatenate([ifeat, icontexts.astype(jnp.bfloat16)], axis=-1)
    tokf = fused_tok_bf16[tokens]                                  # (B, S, Hp) bf16

    def flat_pad(x, w):
        x = x.reshape(N, w)
        if n_pad > N:
            x = jnp.pad(x, ((0, n_pad - N), (0, 0)))
        return x

    ac_f = flat_pad(ac_in, FC)
    tokf_f = flat_pad(tokf, Hp)

    grid = (n_pad // tn,)
    vmem_limit = _vmem_limit_bytes(tn, FC, Hp, D1p)

    cost = pl.CostEstimate(
        flops=2 * N * (FC * D1p + D1p * Hp),
        transcendentals=0,
        bytes_accessed=(n_pad * FC * 2            # fused feature rows (bf16)
                        + n_pad * Hp * 2          # pre-fused token rows (bf16)
                        + n_pad * Hp * 4          # output (f32)
                        + FC * D1p * 2 + D1p * Hp * 2 + Hp * 4),   # weights (once)
    )

    resident = pl.BlockSpec(memory_space=pltpu.MemorySpace.VMEM)   # single VMEM copy

    out_pad = pl.pallas_call(
        _encoder_kernel,
        out_shape=jax.ShapeDtypeStruct((n_pad, Hp), jnp.float32),
        grid_spec=pltpu.PrefetchScalarGridSpec(
            num_scalar_prefetch=0,
            grid=grid,
            in_specs=[
                pl.BlockSpec((tn, FC), lambda i: (i, 0)),   # [ifeat|ictx] tile  (bf16)
                pl.BlockSpec((tn, Hp), lambda i: (i, 0)),   # fused token tile   (bf16)
                resident,                                   # W1     (FC, 4Hp)   (bf16)
                resident,                                   # W2b    (4Hp, Hp)   (bf16)
                resident,                                   # b2_eff (1, Hp)     (f32)
            ],
            out_specs=pl.BlockSpec((tn, Hp), lambda i: (i, 0)),
        ),
        compiler_params=pltpu.CompilerParams(
            dimension_semantics=("parallel",),              # 2 TCs on v7x
            vmem_limit_bytes=vmem_limit,
        ),
        cost_estimate=cost,
    )(ac_f, tokf_f, w1_bf16, w2b_bf16, b2_eff)

    out = out_pad
    if n_pad != N or Hp != H:                               # skip copy when aligned
        out = out[:N, :H]
    return out.reshape(B, S, H)


def advanced_item_encoder_pallas(tokens, icontexts, prep, *, tile_n=None):
    """tokens: int32 (B, S); icontexts: f32 (B, S, C); prep = prepare_params(...)."""
    return _forward(tokens, icontexts,
                    prep["ifeature_bf16"], prep["fused_tok_bf16"],
                    prep["w1_bf16"], prep["w2b_bf16"], prep["b2_eff"],
                    hidden_dim=prep["hidden_dim"], tile_n=tile_n)


def advanced_item_encoder_ref(tokens, icontexts, params):
    """Pure-JAX f32 reference mirroring the PyTorch forward exactly."""
    ifeat = params["ifeature_cache"][tokens]
    ac = jnp.concatenate([ifeat, icontexts.astype(jnp.float32)], axis=-1)
    ac_vec = ac @ params["ac_encoder_w"].T + params["ac_encoder_b"]
    tok_vec = params["token_embedding"][tokens]
    vec = jnp.concatenate([tok_vec, ac_vec], axis=-1)
    return vec @ params["item_encoder_w"].T + params["item_encoder_b"]


def init_params(key, num_items, ifeature_dim, icontext_dim, hidden_dim):
    vocab = num_items + 1
    H = hidden_dim
    ks = jax.random.split(key, 6)
    # frozen ifeature cache (Embedding.from_pretrained)
    ifeature_cache = jax.random.normal(ks[0], (vocab, ifeature_dim), jnp.float32)
    # TokenEmbedding ~ nn.Embedding(vocab, H, padding_idx=0): zero the pad row.
    token_embedding = jax.random.normal(ks[1], (vocab, H), jnp.float32) * 0.02
    token_embedding = token_embedding.at[0].set(0.0)
    # ac_encoder: Linear(F + C, 4H)
    fan_in1 = ifeature_dim + icontext_dim
    lim1 = 1.0 / jnp.sqrt(fan_in1)
    ac_w = jax.random.uniform(ks[2], (4 * H, fan_in1), jnp.float32, -lim1, lim1)
    ac_b = jax.random.uniform(ks[3], (4 * H,), jnp.float32, -lim1, lim1)
    # item_encoder: Linear(H + 4H, H)
    fan_in2 = H + 4 * H
    lim2 = 1.0 / jnp.sqrt(fan_in2)
    it_w = jax.random.uniform(ks[4], (H, fan_in2), jnp.float32, -lim2, lim2)
    it_b = jax.random.uniform(ks[5], (H,), jnp.float32, -lim2, lim2)
    return {
        "ifeature_cache": ifeature_cache,
        "token_embedding": token_embedding,
        "ac_encoder_w": ac_w,
        "ac_encoder_b": ac_b,
        "item_encoder_w": it_w,
        "item_encoder_b": it_b,
    }


if __name__ == "__main__":
    # Small, module-consistent shapes.
    num_items = 15          # vocab = 16
    ifeature_dim = 8
    icontext_dim = 8
    hidden_dim = 32
    batch, seq = 2, 8

    key = jax.random.PRNGKey(0)
    k_params, k_tok, k_ctx = jax.random.split(key, 3)

    params = init_params(k_params, num_items, ifeature_dim, icontext_dim, hidden_dim)
    tokens = jax.random.randint(k_tok, (batch, seq), 0, num_items + 1, jnp.int32)
    icontexts = jax.random.normal(k_ctx, (batch, seq, icontext_dim), jnp.float32)

    # One-time weight preparation (hoisted out of the per-call path).
    prep = prepare_params(params)
    prep = jax.tree_util.tree_map(
        lambda x: jax.block_until_ready(x) if isinstance(x, jax.Array) else x, prep)

    out = advanced_item_encoder_pallas(tokens, icontexts, prep)
    out = jax.block_until_ready(out)

    ref = advanced_item_encoder_ref(tokens, icontexts, params)
    assert out.shape == (batch, seq, hidden_dim)
    # bf16 MXU matmuls with f32 accumulation -> relaxed tolerance vs f32 reference.
    assert jnp.allclose(out, ref, atol=2e-2, rtol=2e-2), "mismatch vs reference"

    print("KERNEL_OK")
</pallas_src>

<mosaic_0001>
module attributes {stable_mosaic.version = 11 : i64} {
  func.func @_encoder_kernel(%arg0: i32, %arg1: memref<16x16xbf16, #tpu.memory_space<vmem>>, %arg2: memref<16x128xbf16, #tpu.memory_space<vmem>>, %arg3: memref<16x128xbf16, #tpu.memory_space<vmem>>, %arg4: memref<128x128xbf16, #tpu.memory_space<vmem>>, %arg5: memref<1x128xf32, #tpu.memory_space<vmem>>, %arg6: memref<16x128xf32, #tpu.memory_space<vmem>>) attributes {dimension_semantics = [#tpu.dimension_semantics<parallel>], iteration_bounds = array<i64: 1>, scalar_prefetch = 0 : i64, scratch_operands = 0 : i64, tpu.core_type = #tpu.core_type<tc>, window_params = [{transform_indices = @transform_0, window_bounds = array<i64: 16, 16>}, {transform_indices = @transform_1, window_bounds = array<i64: 16, 128>}, {pipeline_mode = #tpu.pipeline_mode<synchronous>, transform_indices = @transform_2, window_bounds = array<i64: 16, 128>}, {pipeline_mode = #tpu.pipeline_mode<synchronous>, transform_indices = @transform_3, window_bounds = array<i64: 128, 128>}, {pipeline_mode = #tpu.pipeline_mode<synchronous>, transform_indices = @transform_4, window_bounds = array<i64: 1, 128>}, {transform_indices = @transform_5, window_bounds = array<i64: 16, 128>}]} {
    %c0 = arith.constant 0 : index
    %c0_0 = arith.constant 0 : index
    %0 = vector.load %arg1[%c0, %c0_0] : memref<16x16xbf16, #tpu.memory_space<vmem>>, vector<16x16xbf16>
    %c0_1 = arith.constant 0 : index
    %c0_2 = arith.constant 0 : index
    %1 = vector.load %arg3[%c0_1, %c0_2] : memref<16x128xbf16, #tpu.memory_space<vmem>>, vector<16x128xbf16>
    %cst = arith.constant dense<0.000000e+00> : vector<16x128xf32>
    %2 = tpu.matmul %0, %1, %cst {dimension_numbers = #tpu.dot_dimension_numbers<[1], [0], [0], [1], [0, 0, 1, 1], [], []>} : vector<16x16xbf16>, vector<16x128xbf16>, vector<16x128xf32> -> vector<16x128xf32>
    %c0_3 = arith.constant 0 : index
    %c0_4 = arith.constant 0 : index
    %3 = vector.load %arg2[%c0_3, %c0_4] : memref<16x128xbf16, #tpu.memory_space<vmem>>, vector<16x128xbf16>
    %4 = arith.extf %3 : vector<16x128xbf16> to vector<16x128xf32>
    %5 = arith.truncf %2 : vector<16x128xf32> to vector<16x128xbf16>
    %c0_5 = arith.constant 0 : index
    %c0_6 = arith.constant 0 : index
    %6 = vector.load %arg4[%c0_5, %c0_6] : memref<128x128xbf16, #tpu.memory_space<vmem>>, vector<128x128xbf16>
    %cst_7 = arith.constant dense<0.000000e+00> : vector<16x128xf32>
    %7 = tpu.matmul %5, %6, %cst_7 {dimension_numbers = #tpu.dot_dimension_numbers<[1], [0], [0], [1], [0, 0, 1, 1], [], []>} : vector<16x128xbf16>, vector<128x128xbf16>, vector<16x128xf32> -> vector<16x128xf32>
    %8 = arith.addf %4, %7 : vector<16x128xf32>
    %c0_8 = arith.constant 0 : index
    %c0_9 = arith.constant 0 : index
    %9 = vector.load %arg5[%c0_8, %c0_9] : memref<1x128xf32, #tpu.memory_space<vmem>>, vector<1x128xf32>
    %10 = vector.broadcast %9 : vector<1x128xf32> to vector<16x128xf32>
    %11 = arith.addf %8, %10 : vector<16x128xf32>
    %c0_10 = arith.constant 0 : index
    %c0_11 = arith.constant 0 : index
    %12 = vector.load %arg6[%c0_10, %c0_11] : memref<16x128xf32, #tpu.memory_space<vmem>>, vector<16x128xf32>
    tpu.vector_store %arg6[%c0_10, %c0_11], %11 {strides = array<i32>} : memref<16x128xf32, #tpu.memory_space<vmem>>, vector<16x128xf32>,
    return
  }
  func.func @transform_0(%arg0: i32) -> (i32, i32) {
    %c0_i32 = arith.constant 0 : i32
    %c0_i32_0 = arith.constant 0 : i32
    return %arg0, %c0_i32 : i32, i32
  }
  func.func @transform_1(%arg0: i32) -> (i32, i32) {
    %c0_i32 = arith.constant 0 : i32
    %c0_i32_0 = arith.constant 0 : i32
    return %arg0, %c0_i32 : i32, i32
  }
  func.func @transform_2(%arg0: i32) -> (i32, i32) {
    %c0_i32 = arith.constant 0 : i32
    %c0_i32_0 = arith.constant 0 : i32
    %c0_i32_1 = arith.constant 0 : i32
    return %c0_i32, %c0_i32_0 : i32, i32
  }
  func.func @transform_3(%arg0: i32) -> (i32, i32) {
    %c0_i32 = arith.constant 0 : i32
    %c0_i32_0 = arith.constant 0 : i32
    %c0_i32_1 = arith.constant 0 : i32
    return %c0_i32, %c0_i32_0 : i32, i32
  }
  func.func @transform_4(%arg0: i32) -> (i32, i32) {
    %c0_i32 = arith.constant 0 : i32
    %c0_i32_0 = arith.constant 0 : i32
    %c0_i32_1 = arith.constant 0 : i32
    return %c0_i32, %c0_i32_0 : i32, i32
  }
  func.func @transform_5(%arg0: i32) -> (i32, i32) {
    %c0_i32 = arith.constant 0 : i32
    %c0_i32_0 = arith.constant 0 : i32
    return %arg0, %c0_i32 : i32, i32
  }
}

</mosaic_0001>

<bundles_post_ra>
// kernel: _forward.1
= control target key start
LH: loop header
LB: loop body
LE: loop exit
PB: predicated region body
PF: predicated region fallthrough
CT: control target
= control target key end

     0   :  { %v273_v0 = vmov 0.0   ;;  %vm274_vm0 = vmmov 0   ;;  %vm36_vm1 = vcmask 130048   ;;  %s347_s2 = inlined_call_operand.vmem [shape: bf16[16,128], index: 2, kind: input, shape index: {}]   ;;  %s348_s0 = inlined_call_operand.vmem [shape: bf16[16,16], index: 0, kind: input, shape index: {}]   ;;  %s349_s3 = inlined_call_operand.vmem [shape: bf16[128,128], index: 3, kind: input, shape index: {}]   ;;  %s350_s1 = inlined_call_operand.vmem [shape: bf16[16,128], index: 1, kind: input, shape index: {}]   ;;  %s351_s4 = inlined_call_operand.vmem [shape: f32[1,128], index: 4, kind: input, shape index: {}]   ;;  %s352_s5 = inlined_call_operand.vmem [shape: f32[16,128], index: 5, kind: output, shape index: {}]  }
   0x1   :  { %235 = vmatprep.subr.bf16.mxu0 %v273_v0  ;;  %v263_v1 = vld [vmem:[%s347_s2] sm:$0xff]   ;;  %237 = vmatprep.mubr.msk.bf16.mxu0 %vm274_vm0, %v273_v0  ;;  %v266_v4 = vld [vmem:[%s349_s3 + $0x8] sm:$0xff]   ;;  %v267_v5 = vld [vmem:[%s349_s3 + $0x10] sm:$0xff]  }
   0x2   :  { %v264_v2 = vld [vmem:[%s348_s0] sm:$0xff]   ;;  %241 = vmatprep.subr.bf16.mxu1 %v273_v0  ;;  %257 = vmatprep.mubr.msk.bf16.mxu1 %vm274_vm0, %v273_v0  ;;  %v268_v6 = vld [vmem:[%s349_s3 + $0x18] sm:$0xff]   ;;  %v270_v8 = vld [vmem:[%s349_s3 + $0x28] sm:$0xff]  }
   0x3   :  { %236 = vmatpush3.bf16.msra.mxu0 %v263_v1  ;;  %v265_v3 = vld [vmem:[%s349_s3] sm:$0xff]   ;;  %v271_v9 = vld [vmem:[%s349_s3 + $0x30] sm:$0xff]   ;;  %v272_v10 = vld [vmem:[%s349_s3 + $0x38] sm:$0xff]  }
   0x4   :  { %242 = vmatpush3.bf16.msra.mxu1 %v265_v3  ;;  %v269_v7 = vld [vmem:[%s349_s3 + $0x20] sm:$0xff]  }
   0x5   :  { %243 = vmatprep.subr.bf16.mxu1 %v273_v0  ;;  %v221_v16 = vld [vmem:[%s350_s1] sm:$0xff]  }
   0x6   :  { %238 = vmatmul.mubr.msk.bf16.vlgmr.msra.gmra.mrb[0].mxu0 %vm36_vm1, %v264_v2  ;;  %v222_v17 = vunpack.c.l.bf16 %v221_v16  ;;  %v223_v18 = vunpack.c.h.bf16 %v221_v16  ;;  %v219_v20 = vld [vmem:[%s351_s4] ss:$0 sm:$0xff] }
   0x8   :  { %244 = vmatpush3.bf16.msra.mxu1 %v266_v4 }
   0x9   :  { %245 = vmatprep.subr.bf16.mxu1 %v273_v0 }
   0xc   :  { %246 = vmatpush3.bf16.msra.mxu1 %v267_v5 }
   0xd   :  { %247 = vmatprep.subr.bf16.mxu1 %v273_v0 }
  0x10   :  { %248 = vmatpush3.bf16.msra.mxu1 %v268_v6 }
  0x11   :  { %249 = vmatprep.subr.bf16.mxu1 %v273_v0 }
  0x14   :  { %250 = vmatpush3.bf16.msra.mxu1 %v269_v7 }
  0x15   :  { %251 = vmatprep.subr.bf16.mxu1 %v273_v0 }
  0x18   :  { %252 = vmatpush3.bf16.msra.mxu1 %v270_v8 }
  0x19   :  { %253 = vmatprep.subr.bf16.mxu1 %v273_v0 }
  0x1c   :  { %254 = vmatpush3.bf16.msra.mxu1 %v271_v9 }
  0x1d   :  { %255 = vmatprep.subr.bf16.mxu1 %v273_v0 }
  0x20   :  { %256 = vmatpush3.bf16.msra.mxu1 %v272_v10 }
  0xd9   :  { %v74_v11 = vpop.f32.mrb[0].mxu0 }
  0xda   :  { %v239_v12 = vpop.f32.mrb[1].mxu0 }
  0xdb   :  { %v77_v13 = vpop.f32.mrb[2].mxu0 }
  0xdc   :  { %v85_v14 = vpack.c.bf16 %v77_v13, %v74_v11  ;;  %v240_v15 = vpop.f32.mrb[3].mxu0 }
  0xde   :  { %258 = vmatmul.mubr.bf16.vlgmr.msra.gmra.mrb[0].mxu1 %v85_v14 }
 0x1b1   :  { %v184_v19 = vpop.f32.mrb[0].mxu1 }
 0x1b2   :  { %v191_v21 = vadd.f32 %v222_v17, %v184_v19  ;;  %v259_v22 = vpop.f32.mrb[1].mxu1 }
 0x1b3   :  { %v187_v23 = vpop.f32.mrb[2].mxu1 }
 0x1b4   :  { %v200_v24 = vadd.f32 %v219_v20, %v191_v21  ;;  %v192_v25 = vadd.f32 %v223_v18, %v187_v23  ;;  %v260_v26 = vpop.f32.mrb[3].mxu1 }
 0x1b6   :  { %202 = vst [vmem:[%s352_s5] sm:$0xff] %v200_v24  ;;  %v201_v27 = vadd.f32 %v219_v20, %v192_v25 }
 0x1b8   :  { %203 = vst [vmem:[%s352_s5 + $0x8] sm:$0xff] %v201_v27 }

</bundles_post_ra>
